<compile_context>
chip_gen: v5e
topology: v5e:2x2
jax: 0.10.0
libtpu: 0.0.40
codegen_flags: <defaults>
</compile_context>

<pallas_src>
import jax
import jax.numpy as jnp
from jax.experimental import pallas as pl
from jax.experimental.pallas import tpu as pltpu

N_STATES = 4        # e.g. CartPole observation dim
N_ACTIONS = 2       # e.g. CartPole action dim
HIDDEN = 50

LANES = 128                # lane width for the hidden dim / param slab
OUT_PAD = 8                # padded output width (real Q-values in [:N_ACTIONS])
NEG_FILL = -1e30           # fill for padded output lanes (argmax-safe)

# Packed parameter slab layout (rows x 128 lanes, f32, zero-padded):
ROW_W1 = 0                 # rows [0, N_STATES)     : fc1 weight, (in, out) layout
ROW_B1 = 8                 # row 8                  : fc1 bias
ROW_W2 = 16                # rows [16, 16 + LANES)  : fc2 weight padded to (128, 128)
ROW_B2 = ROW_W2 + LANES    # row 144                : fc2 bias (pad lanes = NEG_FILL)
SLAB_ROWS = ROW_B2 + 8     # 152 rows x 128 lanes ~= 76 KiB, (8,128)-aligned

MAX_TILE = 1024            # largest batch tile (rows) for the throughput path


def mlp_kernel(x_ref, p_ref, o_ref):
    x = x_ref[...]                                       # (tb, N_STATES) f32
    b1 = p_ref[ROW_B1:ROW_B1 + 1, :]                     # (1, 128); pad lanes are 0

    # fc1: K = 4 outer-product accumulate on the VPU.
    # (MXU variant measured as optional per review; kept on VPU since the
    #  kernel is DMA / per-step-overhead bound, not VALU bound.)
    h = b1 + x[:, 0:1] * p_ref[ROW_W1:ROW_W1 + 1, :]
    for k in range(1, N_STATES):                         # static unroll
        h = h + x[:, k:k + 1] * p_ref[ROW_W1 + k:ROW_W1 + k + 1, :]
    h = jnp.maximum(h, 0.0)                              # ReLU; pad lanes stay 0

    # fc2: (tb,128) @ (128,128) on the otherwise-idle MXU, full f32 precision.
    w2 = p_ref[ROW_W2:ROW_W2 + LANES, :]                 # (128, 128), pad rows/cols 0
    b2 = p_ref[ROW_B2:ROW_B2 + 1, :]                     # (1, 128); pad lanes NEG_FILL
    av = jnp.dot(h, w2, preferred_element_type=jnp.float32,
                 precision=jax.lax.Precision.HIGHEST) + b2

    # Narrow store: only 8 lanes go back to HBM (16x less writeback than 128).
    o_ref[...] = av[:, :OUT_PAD].astype(o_ref.dtype)


def pack_params(w1, b1, w2, b2):
    """Pack PyTorch-layout params (weight: (out, in), bias: (out,)) into one slab."""
    slab = jnp.zeros((SLAB_ROWS, LANES), jnp.float32)
    slab = slab.at[ROW_W1:ROW_W1 + N_STATES, :HIDDEN].set(w1.T.astype(jnp.float32))
    slab = slab.at[ROW_B1, :HIDDEN].set(b1.astype(jnp.float32))
    slab = slab.at[ROW_W2:ROW_W2 + HIDDEN, :N_ACTIONS].set(w2.T.astype(jnp.float32))
    slab = slab.at[ROW_B2, :N_ACTIONS].set(b2.astype(jnp.float32))
    # Padded output lanes get a huge negative bias so an argmax over the padded
    # (b_pad, OUT_PAD) output still picks a real action (enables slice-free use).
    slab = slab.at[ROW_B2, N_ACTIONS:].set(NEG_FILL)
    return slab


def _round_up(v, m):
    return ((v + m - 1) // m) * m


def _cdiv(a, b):
    return -(-a // b)


def _choose_tiling(batch):
    """Return (tile_rows, padded_batch). Python ints (shapes are static)."""
    b8 = _round_up(max(batch, 1), 8)
    if b8 <= 128:
        # Latency path (B=1 greedy action, B=32 replay minibatch): one grid step.
        return b8, b8
    # Throughput path: largest tile <= MAX_TILE giving an EVEN number of grid
    # steps >= 2, so v7x's two TensorCores both get work via the parallel axis
    # without collapsing the grid to a single step.
    n_steps = 2 * _cdiv(b8, 2 * MAX_TILE)
    tb = min(MAX_TILE, _round_up(_cdiv(b8, n_steps), 8))
    return tb, n_steps * tb


@jax.jit
def net_forward_padded(x, slab):
    """x: (B, N_STATES) f32; slab: packed params.

    Returns the padded Q-value block of shape (b_pad, OUT_PAD) f32.
    Real values live at [:B, :N_ACTIONS]; padded lanes are ~NEG_FILL and padded
    batch rows are garbage — consumers (greedy argmax / TD target gather) should
    read this directly to avoid an extra slice kernel on the latency path.
    """
    B = x.shape[0]
    tb, b_pad = _choose_tiling(B)
    xp = x if b_pad == B else jnp.pad(x, ((0, b_pad - B), (0, 0)))

    return pl.pallas_call(
        mlp_kernel,
        out_shape=jax.ShapeDtypeStruct((b_pad, OUT_PAD), jnp.float32),
        grid=(b_pad // tb,),
        in_specs=[
            pl.BlockSpec((tb, N_STATES), lambda i: (i, 0)),      # per-step batch tile
            pl.BlockSpec((SLAB_ROWS, LANES), lambda i: (0, 0)),  # resident param slab
        ],
        out_specs=pl.BlockSpec((tb, OUT_PAD), lambda i: (i, 0)), # narrow 8-lane output
        compiler_params=pltpu.CompilerParams(
            dimension_semantics=("parallel",)),                  # shard batch on v7x TCs
    )(xp, slab)


@jax.jit
def net_forward(x, slab):
    """Exact PyTorch-module output shape (B, N_ACTIONS)."""
    return net_forward_padded(x, slab)[:x.shape[0], :N_ACTIONS]


def init_params(key):
    k1, k2, k3, k4 = jax.random.split(key, 4)
    # PyTorch nn.Linear stores weight as (out, in); the module uses .normal_(0, 0.1).
    w1 = 0.1 * jax.random.normal(k1, (HIDDEN, N_STATES), jnp.float32)
    w2 = 0.1 * jax.random.normal(k2, (N_ACTIONS, HIDDEN), jnp.float32)
    # Default nn.Linear bias init: U(-1/sqrt(fan_in), 1/sqrt(fan_in)).
    b1 = jax.random.uniform(k3, (HIDDEN,), jnp.float32,
                            -1.0 / (N_STATES ** 0.5), 1.0 / (N_STATES ** 0.5))
    b2 = jax.random.uniform(k4, (N_ACTIONS,), jnp.float32,
                            -1.0 / (HIDDEN ** 0.5), 1.0 / (HIDDEN ** 0.5))
    return w1, b1, w2, b2


if __name__ == "__main__":
    key = jax.random.PRNGKey(0)
    kx1, kx2, kp = jax.random.split(key, 3)
    w1, b1, w2, b2 = init_params(kp)
    slab = pack_params(w1, b1, w2, b2)

    def reference(x):
        # Pure-JAX reference with PyTorch semantics: relu(x @ W1.T + b1) @ W2.T + b2.
        return jnp.maximum(x @ w1.T + b1, 0.0) @ w2.T + b2

    # 1) DQN replay-minibatch shape (single-step latency path).
    x_small = jax.random.normal(kx1, (32, N_STATES), jnp.float32)
    out_small = net_forward(x_small, slab)
    jax.block_until_ready(out_small)
    assert out_small.shape == (32, N_ACTIONS)
    assert jnp.allclose(out_small, reference(x_small), atol=1e-5, rtol=1e-5), \
        "small-batch mismatch vs reference"

    # 2) Larger batch exercising the multi-step parallel grid + batch padding,
    #    consumed via the slice-free padded output.
    x_big = jax.random.normal(kx2, (200, N_STATES), jnp.float32)
    out_big_padded = net_forward_padded(x_big, slab)       # (208, 8)
    jax.block_until_ready(out_big_padded)
    out_big = out_big_padded[:200, :N_ACTIONS]
    assert jnp.allclose(out_big, reference(x_big), atol=1e-5, rtol=1e-5), \
        "large-batch mismatch vs reference"
    # Padded-lane fill makes argmax over the padded output pick real actions.
    assert jnp.array_equal(jnp.argmax(out_big_padded[:200], axis=-1),
                           jnp.argmax(out_big, axis=-1))

    print("KERNEL_OK")
</pallas_src>

<mosaic_0001>
module attributes {stable_mosaic.version = 11 : i64} {
  func.func @mlp_kernel(%arg0: i32, %arg1: memref<32x4xf32, #tpu.memory_space<vmem>>, %arg2: memref<152x128xf32, #tpu.memory_space<vmem>>, %arg3: memref<32x8xf32, #tpu.memory_space<vmem>>) attributes {dimension_semantics = [#tpu.dimension_semantics<parallel>], iteration_bounds = array<i64: 1>, scalar_prefetch = 0 : i64, scratch_operands = 0 : i64, tpu.core_type = #tpu.core_type<tc>, window_params = [{transform_indices = @transform_0, window_bounds = array<i64: 32, 4>}, {pipeline_mode = #tpu.pipeline_mode<synchronous>, transform_indices = @transform_1, window_bounds = array<i64: 152, 128>}, {transform_indices = @transform_2, window_bounds = array<i64: 32, 8>}]} {
    %c0 = arith.constant 0 : index
    %c0_0 = arith.constant 0 : index
    %0 = vector.load %arg1[%c0, %c0_0] : memref<32x4xf32, #tpu.memory_space<vmem>>, vector<32x4xf32>
    %c8 = arith.constant 8 : index
    %c0_1 = arith.constant 0 : index
    %1 = vector.load %arg2[%c8, %c0_1] : memref<152x128xf32, #tpu.memory_space<vmem>>, vector<1x128xf32>
    %2 = vector.extract_strided_slice %0 {offsets = [0, 0], sizes = [32, 1], strides = [1, 1]} : vector<32x4xf32> to vector<32x1xf32>
    %c0_2 = arith.constant 0 : index
    %c0_3 = arith.constant 0 : index
    %3 = vector.load %arg2[%c0_2, %c0_3] : memref<152x128xf32, #tpu.memory_space<vmem>>, vector<1x128xf32>
    %4 = vector.broadcast %2 : vector<32x1xf32> to vector<32x128xf32>
    %5 = vector.broadcast %3 : vector<1x128xf32> to vector<32x128xf32>
    %6 = arith.mulf %4, %5 : vector<32x128xf32>
    %7 = vector.broadcast %1 : vector<1x128xf32> to vector<32x128xf32>
    %8 = arith.addf %7, %6 : vector<32x128xf32>
    %9 = vector.extract_strided_slice %0 {offsets = [0, 1], sizes = [32, 1], strides = [1, 1]} : vector<32x4xf32> to vector<32x1xf32>
    %c1 = arith.constant 1 : index
    %c0_4 = arith.constant 0 : index
    %10 = vector.load %arg2[%c1, %c0_4] : memref<152x128xf32, #tpu.memory_space<vmem>>, vector<1x128xf32>
    %11 = vector.broadcast %9 : vector<32x1xf32> to vector<32x128xf32>
    %12 = vector.broadcast %10 : vector<1x128xf32> to vector<32x128xf32>
    %13 = arith.mulf %11, %12 : vector<32x128xf32>
    %14 = arith.addf %8, %13 : vector<32x128xf32>
    %15 = vector.extract_strided_slice %0 {offsets = [0, 2], sizes = [32, 1], strides = [1, 1]} : vector<32x4xf32> to vector<32x1xf32>
    %c2 = arith.constant 2 : index
    %c0_5 = arith.constant 0 : index
    %16 = vector.load %arg2[%c2, %c0_5] : memref<152x128xf32, #tpu.memory_space<vmem>>, vector<1x128xf32>
    %17 = vector.broadcast %15 : vector<32x1xf32> to vector<32x128xf32>
    %18 = vector.broadcast %16 : vector<1x128xf32> to vector<32x128xf32>
    %19 = arith.mulf %17, %18 : vector<32x128xf32>
    %20 = arith.addf %14, %19 : vector<32x128xf32>
    %21 = vector.extract_strided_slice %0 {offsets = [0, 3], sizes = [32, 1], strides = [1, 1]} : vector<32x4xf32> to vector<32x1xf32>
    %c3 = arith.constant 3 : index
    %c0_6 = arith.constant 0 : index
    %22 = vector.load %arg2[%c3, %c0_6] : memref<152x128xf32, #tpu.memory_space<vmem>>, vector<1x128xf32>
    %23 = vector.broadcast %21 : vector<32x1xf32> to vector<32x128xf32>
    %24 = vector.broadcast %22 : vector<1x128xf32> to vector<32x128xf32>
    %25 = arith.mulf %23, %24 : vector<32x128xf32>
    %26 = arith.addf %20, %25 : vector<32x128xf32>
    %cst = arith.constant 0.000000e+00 : f32
    %27 = vector.broadcast %cst : f32 to vector<32x128xf32>
    %28 = arith.maximumf %26, %27 : vector<32x128xf32>
    %c16 = arith.constant 16 : index
    %c0_7 = arith.constant 0 : index
    %29 = vector.load %arg2[%c16, %c0_7] : memref<152x128xf32, #tpu.memory_space<vmem>>, vector<128x128xf32>
    %c144 = arith.constant 144 : index
    %c0_8 = arith.constant 0 : index
    %30 = vector.load %arg2[%c144, %c0_8] : memref<152x128xf32, #tpu.memory_space<vmem>>, vector<1x128xf32>
    %cst_9 = arith.constant dense<0.000000e+00> : vector<32x128xf32>
    %31 = tpu.matmul %28, %29, %cst_9 {dimension_numbers = #tpu.dot_dimension_numbers<[1], [0], [0], [1], [0, 0, 1, 1], [], []>, precision = #tpu.contract_precision<fp32>} : vector<32x128xf32>, vector<128x128xf32>, vector<32x128xf32> -> vector<32x128xf32>
    %32 = vector.broadcast %30 : vector<1x128xf32> to vector<32x128xf32>
    %33 = arith.addf %31, %32 : vector<32x128xf32>
    %34 = vector.extract_strided_slice %33 {offsets = [0, 0], sizes = [32, 8], strides = [1, 1]} : vector<32x128xf32> to vector<32x8xf32>
    %c0_10 = arith.constant 0 : index
    %c0_11 = arith.constant 0 : index
    %35 = vector.load %arg3[%c0_10, %c0_11] : memref<32x8xf32, #tpu.memory_space<vmem>>, vector<32x8xf32>
    tpu.vector_store %arg3[%c0_10, %c0_11], %34 {strides = array<i32>} : memref<32x8xf32, #tpu.memory_space<vmem>>, vector<32x8xf32>,
    return
  }
  func.func @transform_0(%arg0: i32) -> (i32, i32) {
    %c0_i32 = arith.constant 0 : i32
    %c0_i32_0 = arith.constant 0 : i32
    return %arg0, %c0_i32 : i32, i32
  }
  func.func @transform_1(%arg0: i32) -> (i32, i32) {
    %c0_i32 = arith.constant 0 : i32
    %c0_i32_0 = arith.constant 0 : i32
    %c0_i32_1 = arith.constant 0 : i32
    return %c0_i32, %c0_i32_0 : i32, i32
  }
  func.func @transform_2(%arg0: i32) -> (i32, i32) {
    %c0_i32 = arith.constant 0 : i32
    %c0_i32_0 = arith.constant 0 : i32
    return %arg0, %c0_i32 : i32, i32
  }
}

</mosaic_0001>

<bundles_post_ra>
// kernel: net_forward_padded.1
= control target key start
LH: loop header
LB: loop body
LE: loop exit
PB: predicated region body
PF: predicated region fallthrough
CT: control target
= control target key end

     0   :  { %7 = vsyncpa [#allocation3], 0  ;;  %s695_s12 = smov [#allocation2]   ;;  %s696_s14 = smov 128   ;;  %s980_s0 = inlined_call_operand.vmem [shape: f32[32,4], index: 0, kind: input, shape index: {}]   ;;  %s981_s1 = inlined_call_operand.hbm [shape: f32[152,128], index: 1, kind: input, shape index: {}]   ;;  %s982_s2 = inlined_call_operand.vmem [shape: f32[32,8], index: 2, kind: output, shape index: {}]  }
   0x1   :  { %s14_s11 = sshll.u32 %s981_s1, 4  ;;  %s16_s13 = sshll.u32 %s695_s12, 4  ;;  %s15_s11 = int_to_ptr.hbm [resolvable:$true] %s14_s11  ;;  %s17_s13 = int_to_ptr.vmem [resolvable:$true] %s16_s13 }
   0x2   :  { %s697_s15 = smov 8  }
   0x3   :  { %22 = dma.hbm_to_vmem [thread:$0]  %s15_s11, 2432, %s17_s13, [#allocation3], %s696_s14, %s696_s14, %s697_s15  }
   0x4   :  { %693 = dma.done.wait [#allocation3], 2432  }
   0x5   :  { %694 = vsyncadd [#allocation3], 4294964864  ;;  %v698_v0 = vmov 2   ;;  %v699_v1 = vmov 0   ;;  %v27_v2 = vld [vmem:[%s980_s0] sm:$0xff]  ;;  %v28_v3 = vld [vmem:[%s980_s0 + $0x8] sm:$0xff] }
   0x6   :  { %648 = vset.pattern.permute.xlu1 %v698_v0  ;;  %646 = vset.pattern.permute.xlu0 %v699_v1  ;;  %v700_v4 = vmov 3   ;;  %v701_v5 = vmov 1   ;;  %v29_v6 = vld [vmem:[%s980_s0 + $0x10] sm:$0xff]  ;;  %v160_v7 = vld [vmem:[#allocation2 + $0x88] sm:$0xff]  ;;  %v159_v8 = vld [vmem:[#allocation2 + $0x80] sm:$0xff]  ;;  %vm597_vm0 = vcmask 64512  }
   0x7   :  { %650 = vset.pattern.permute.xlu2 %v699_v1  ;;  %91 = vperm.xlu1 %648, %v27_v2   ;;  %v158_v9 = vld [vmem:[#allocation2 + $0x78] sm:$0xff]  ;;  %v730_v10 = vand.u32 4294901760, %v160_v7  ;;  %v732_v11 = vand.u32 4294901760, %v159_v8  ;;  %v157_v26 = vld [vmem:[#allocation2 + $0x70] sm:$0xff]  ;;  %v156_v27 = vld [vmem:[#allocation2 + $0x68] sm:$0xff] }
   0x8   :  { %35 = vperm.xlu0 %646, %v27_v2   ;;  %40 = vperm.xlu2 %650, %v28_v3   ;;  %v734_v12 = vand.u32 4294901760, %v158_v9  ;;  %v30_v21 = vld [vmem:[%s980_s0 + $0x18] sm:$0xff]  ;;  %v760_v28 = vand.u32 4294901760, %v157_v26  ;;  %v762_v29 = vand.u32 4294901760, %v156_v27  ;;  %v155_v38 = vld [vmem:[#allocation2 + $0x60] sm:$0xff]  ;;  %v153_v43 = vld [vmem:[#allocation2 + $0x50] sm:$0xff] }
   0x9   :  { %v229_v13 = vsub.f32 %v160_v7, %v730_v10  ;;  %v235_v14 = vsub.f32 %v159_v8, %v732_v11  ;;  %411 = vmatpush.msra.mxu3 %v730_v10  ;;  %164 = vmatpush.msra.mxu0 %v730_v10  ;;  %v776_v39 = vand.u32 4294901760, %v155_v38  ;;  %v154_v40 = vld [vmem:[#allocation2 + $0x58] sm:$0xff]  ;;  %v786_v46 = vand.u32 4294901760, %v153_v43  ;;  %v152_v47 = vld [vmem:[#allocation2 + $0x48] sm:$0xff]  ;;  %v151_v52 = vld [vmem:[#allocation2 + $0x40] sm:$0xff] }
   0xa   :  { %v241_v15 = vsub.f32 %v158_v9, %v734_v12  ;;  %v247_v30 = vsub.f32 %v157_v26, %v760_v28  ;;  %v253_v31 = vsub.f32 %v156_v27, %v762_v29  ;;  %v779_v42 = vand.u32 4294901760, %v154_v40  ;;  %v150_v58 = vld [vmem:[#allocation2 + $0x38] sm:$0xff] }
   0xb   :  { %v741_v16 = vand.u32 4294901760, %v229_v13  ;;  %v743_v17 = vand.u32 4294901760, %v235_v14  ;;  %343 = vmatpush.msra.mxu2 %v229_v13  ;;  %413 = vmatpush.msra.mxu3 %v732_v11  ;;  %v259_v41 = vsub.f32 %v155_v38, %v776_v39  ;;  %v271_v50 = vsub.f32 %v153_v43, %v786_v46 }
   0xc   :  { %v745_v18 = vand.u32 4294901760, %v241_v15  ;;  %166 = vmatpush.msra.mxu0 %v732_v11  ;;  %v768_v32 = vand.u32 4294901760, %v247_v30  ;;  %v770_v33 = vand.u32 4294901760, %v253_v31  ;;  %v265_v45 = vsub.f32 %v154_v40, %v779_v42 }
   0xd   :  { %v231_v19 = vsub.f32 %v229_v13, %v741_v16  ;;  %v237_v20 = vsub.f32 %v235_v14, %v743_v17  ;;  %346 = vmatpush.msra.mxu2 %v235_v14  ;;  %415 = vmatpush.msra.mxu3 %v734_v12  ;;  %v783_v44 = vand.u32 4294901760, %v259_v41  ;;  %v794_v51 = vand.u32 4294901760, %v152_v47 }
   0xe   :  { %v243_v23 = vsub.f32 %v241_v15, %v745_v18  ;;  %168 = vmatpush.msra.mxu0 %v734_v12  ;;  %v249_v34 = vsub.f32 %v247_v30, %v768_v32  ;;  %v255_v35 = vsub.f32 %v253_v31, %v770_v33  ;;  %v791_v49 = vand.u32 4294901760, %v265_v45 }
   0xf   :  { %649 = vset.pattern.permute.xlu1 %v700_v4  ;;  %v232_v22 = vand.u32 4294901760, %v231_v19  ;;  %349 = vmatpush.msra.mxu2 %v241_v15  ;;  %v238_v24 = vand.u32 4294901760, %v237_v20  ;;  %v261_v48 = vsub.f32 %v259_v41, %v783_v44  ;;  %v799_v55 = vand.u32 4294901760, %v271_v50  ;;  %v147_v15 = vld [vmem:[#allocation2 + $0x20] sm:$0xff] }
  0x10   :  { %647 = vset.pattern.permute.xlu0 %v701_v5  ;;  %117 = vperm.xlu1 %649, %v27_v2   ;;  %v244_v25 = vand.u32 4294901760, %v243_v23  ;;  %v250_v36 = vand.u32 4294901760, %v249_v34  ;;  %v256_v37 = vand.u32 4294901760, %v255_v35  ;;  %v267_v54 = vsub.f32 %v265_v45, %v791_v49  ;;  %v145_v34 = vld [vmem:[#allocation2 + $0x10] sm:$0xff] }
  0x11   :  { %65 = vperm.xlu0 %647, %v27_v2   ;;  %651 = vset.pattern.permute.xlu2 %v701_v5  ;;  %v262_v53 = vand.u32 4294901760, %v261_v48  ;;  %v277_v56 = vsub.f32 %v152_v47, %v794_v51  ;;  %v803_v57 = vand.u32 4294901760, %v151_v52  ;;  %v273_v60 = vsub.f32 %v271_v50, %v799_v55 }
  0x12   :  { %69 = vperm.xlu2 %651, %v28_v3   ;;  %233 = vmatpush.msra.mxu1 %v232_v22  ;;  %v268_v59 = vand.u32 4294901760, %v267_v54  ;;  %v809_v62 = vand.u32 4294901760, %v150_v58  ;;  %v833_v22 = vand.u32 4294901760, %v147_v15  ;;  %v847_v38 = vand.u32 4294901760, %v145_v34 }
  0x13   :  { %417 = vmatpush.msra.mxu3 %v760_v28  ;;  %170 = vmatpush.msra.mxu0 %v760_v28  ;;  %v807_v61 = vand.u32 4294901760, %v277_v56  ;;  %v283_v63 = vsub.f32 %v151_v52, %v803_v57 }
  0x14   :  { %239 = vmatpush.msra.mxu1 %v238_v24  ;;  %352 = vmatpush.msra.mxu2 %v247_v30  ;;  %v146_v24 = vld [vmem:[#allocation2 + $0x18] sm:$0xff]  ;;  %v307_v30 = vsub.f32 %v147_v15, %v833_v22 }
  0x15   :  { %419 = vmatpush.msra.mxu3 %v762_v29  ;;  %172 = vmatpush.msra.mxu0 %v762_v29  ;;  %v279_v2 = vsub.f32 %v277_v56, %v807_v61 }
  0x16   :  { %245 = vmatpush.msra.mxu1 %v244_v25  ;;  %355 = vmatpush.msra.mxu2 %v253_v31  ;;  %v842_v31 = vand.u32 4294901760, %v146_v24 }
  0x17   :  { %421 = vmatpush.msra.mxu3 %v776_v39  ;;  %174 = vmatpush.msra.mxu0 %v776_v39  ;;  %v280_v7 = vand.u32 4294901760, %v279_v2 }
  0x18   :  { %652 = vset.pattern.permute.xlu1 %v698_v0  ;;  %251 = vmatpush.msra.mxu1 %v250_v36  ;;  %v313_v40 = vsub.f32 %v146_v24, %v842_v31 }
  0x19   :  { %654 = vset.pattern.permute.xlu0 %v699_v1  ;;  %95 = vperm.xlu1 %652, %v28_v3  }
  0x1a   :  { %45 = vperm.xlu0 %654, %v29_v6   ;;  %653 = vset.pattern.permute.xlu2 %v700_v4  ;;  %v856_v47 = vand.u32 4294901760, %v313_v40 }
  0x1b   :  { %121 = vperm.xlu2 %653, %v28_v3   ;;  %257 = vmatpush.msra.mxu1 %v256_v37  ;;  %v289_v3 = vsub.f32 %v150_v58, %v809_v62  ;;  %v845_v37 = vand.u32 4294901760, %v307_v30 }
  0x1c   :  { %358 = vmatpush.msra.mxu2 %v259_v41  ;;  %423 = vmatpush.msra.mxu3 %v779_v42  ;;  %v315_v52 = vsub.f32 %v313_v40, %v856_v47 }
  0x1d   :  { %176 = vmatpush.msra.mxu0 %v779_v42  ;;  %263 = vmatpush.msra.mxu1 %v262_v53  ;;  %v821_v8 = vand.u32 4294901760, %v289_v3  ;;  %v309_v43 = vsub.f32 %v307_v30, %v845_v37 }
  0x1e   :  { %361 = vmatpush.msra.mxu2 %v265_v45  ;;  %425 = vmatpush.msra.mxu3 %v786_v46  ;;  %v319_v45 = vsub.f32 %v145_v34, %v847_v38  ;;  %v316_v54 = vand.u32 4294901760, %v315_v52 }
  0x1f   :  { %178 = vmatpush.msra.mxu0 %v786_v46  ;;  %269 = vmatpush.msra.mxu1 %v268_v59  ;;  %v291_v19 = vsub.f32 %v289_v3, %v821_v8  ;;  %v310_v48 = vand.u32 4294901760, %v309_v43 }
  0x20   :  { %364 = vmatpush.msra.mxu2 %v271_v50  ;;  %427 = vmatpush.msra.mxu3 %v794_v51  ;;  %v858_v50 = vand.u32 4294901760, %v319_v45 }
  0x21   :  { %655 = vset.pattern.permute.xlu1 %v701_v5  ;;  %180 = vmatpush.msra.mxu0 %v794_v51  ;;  %v292_v25 = vand.u32 4294901760, %v291_v19 }
  0x22   :  { %659 = vset.pattern.permute.xlu0 %v701_v5  ;;  %73 = vperm.xlu1 %655, %v29_v6   ;;  %v818_v5 = vand.u32 4294901760, %v283_v63  ;;  %v321_v53 = vsub.f32 %v319_v45, %v858_v50 }
  0x23   :  { %77 = vperm.xlu0 %659, %v30_v21   ;;  %656 = vset.pattern.permute.xlu2 %v698_v0 }
  0x24   :  { %99 = vperm.xlu2 %656, %v29_v6   ;;  %367 = vmatpush.msra.mxu2 %v277_v56  ;;  %v285_v14 = vsub.f32 %v283_v63, %v818_v5  ;;  %v322_v56 = vand.u32 4294901760, %v321_v53 }
  0x25   :  { %429 = vmatpush.msra.mxu3 %v803_v57  ;;  %182 = vmatpush.msra.mxu0 %v803_v57 }
  0x26   :  { %370 = vmatpush.msra.mxu2 %v283_v63  ;;  %v286_v23 = vand.u32 4294901760, %v285_v14 }
  0x27   :  { %431 = vmatpush.msra.mxu3 %v809_v62  ;;  %184 = vmatpush.msra.mxu0 %v809_v62 }
  0x28   :  { %373 = vmatpush.msra.mxu2 %v289_v3 }
  0x2a   :  { %657 = vset.pattern.permute.xlu1 %v700_v4 }
  0x2b   :  { %662 = vset.pattern.permute.xlu0 %v700_v4  ;;  %125 = vperm.xlu1 %657, %v29_v6   ;;  %v148_v6 = vld [vmem:[#allocation2 + $0x28] sm:$0xff] }
  0x2c   :  { %658 = vset.pattern.permute.xlu2 %v699_v1  ;;  %v274_v1 = vand.u32 4294901760, %v273_v60  ;;  %v824_v13 = vand.u32 4294901760, %v148_v6 }
  0x2d   :  { %50 = vperm.xlu2 %658, %v30_v21  }
  0x2e   :  { %275 = vmatpush.msra.mxu1 %v274_v1 }
  0x30   :  { %281 = vmatpush.msra.mxu1 %v280_v7 }
  0x32   :  { %287 = vmatpush.msra.mxu1 %v286_v23 }
  0x33   :  { %660 = vset.pattern.permute.xlu1 %v698_v0  ;;  %v149_v0 = vld [vmem:[#allocation2 + $0x30] sm:$0xff] }
  0x34   :  { %103 = vperm.xlu1 %660, %v30_v21   ;;  %293 = vmatpush.msra.mxu1 %v292_v25 }
  0x35   :  { %661 = vset.pattern.permute.xlu2 %v700_v4  ;;  %v816_v4 = vand.u32 4294901760, %v149_v0 }
  0x36   :  { %129 = vperm.xlu2 %661, %v30_v21   ;;  %v301_v21 = vsub.f32 %v148_v6, %v824_v13 }
  0x37   :  { %v295_v9 = vsub.f32 %v149_v0, %v816_v4  ;;  %433 = vmatpush.msra.mxu3 %v816_v4  ;;  %186 = vmatpush.msra.mxu0 %v816_v4 }
  0x38   :  { %v838_v27 = vand.u32 4294901760, %v301_v21 }
  0x39   :  { %v830_v20 = vand.u32 4294901760, %v295_v9  ;;  %376 = vmatpush.msra.mxu2 %v295_v9  ;;  %435 = vmatpush.msra.mxu3 %v824_v13 }
  0x3a   :  { %188 = vmatpush.msra.mxu0 %v824_v13  ;;  %v303_v36 = vsub.f32 %v301_v21, %v838_v27 }
  0x3b   :  { %v297_v26 = vsub.f32 %v295_v9, %v830_v20  ;;  %379 = vmatpush.msra.mxu2 %v301_v21  ;;  %437 = vmatpush.msra.mxu3 %v833_v22 }
  0x3c   :  { %190 = vmatpush.msra.mxu0 %v833_v22  ;;  %v304_v41 = vand.u32 4294901760, %v303_v36 }
  0x3d   :  { %v298_v35 = vand.u32 4294901760, %v297_v26  ;;  %382 = vmatpush.msra.mxu2 %v307_v30  ;;  %439 = vmatpush.msra.mxu3 %v842_v31 }
  0x3e   :  { %192 = vmatpush.msra.mxu0 %v842_v31 }
  0x3f   :  { %299 = vmatpush.msra.mxu1 %v298_v35  ;;  %385 = vmatpush.msra.mxu2 %v313_v40 }
  0x40   :  { %441 = vmatpush.msra.mxu3 %v847_v38  ;;  %194 = vmatpush.msra.mxu0 %v847_v38 }
  0x41   :  { %305 = vmatpush.msra.mxu1 %v304_v41  ;;  %388 = vmatpush.msra.mxu2 %v319_v45 }
  0x42   :  { %623 = vmatpush.msrb.mxu3 %v730_v10  ;;  %470 = vmatpush.msrb.mxu0 %v741_v16 }
  0x43   :  { %607 = vmatpush.msrb.mxu2 %v741_v16  ;;  %311 = vmatpush.msra.mxu1 %v310_v48 }
  0x44   :  { %624 = vmatpush.msrb.mxu3 %v732_v11  ;;  %474 = vmatpush.msrb.mxu0 %v743_v17 }
  0x45   :  { %608 = vmatpush.msrb.mxu2 %v743_v17  ;;  %317 = vmatpush.msra.mxu1 %v316_v54 }
  0x46   :  { %625 = vmatpush.msrb.mxu3 %v734_v12  ;;  %478 = vmatpush.msrb.mxu0 %v745_v18 }
  0x47   :  { %609 = vmatpush.msrb.mxu2 %v745_v18  ;;  %323 = vmatpush.msra.mxu1 %v322_v56 }
  0x48   :  { %626 = vmatpush.msrb.mxu3 %v760_v28  ;;  %482 = vmatpush.msrb.mxu0 %v768_v32 }
  0x49   :  { %549 = vmatpush.msrb.mxu1 %v730_v10  ;;  %610 = vmatpush.msrb.mxu2 %v768_v32 }
  0x4a   :  { %627 = vmatpush.msrb.mxu3 %v762_v29  ;;  %486 = vmatpush.msrb.mxu0 %v770_v33 }
  0x4b   :  { %551 = vmatpush.msrb.mxu1 %v732_v11  ;;  %611 = vmatpush.msrb.mxu2 %v770_v33  ;;  %v915_v33 = vld [vmem:[#allocation2 + $0x1] ss:$0 sm:$0xff] }
  0x4c   :  { %628 = vmatpush.msrb.mxu3 %v776_v39  ;;  %490 = vmatpush.msrb.mxu0 %v783_v44 }
  0x4d   :  { %553 = vmatpush.msrb.mxu1 %v734_v12  ;;  %612 = vmatpush.msrb.mxu2 %v783_v44  ;;  %v895_v12 = vld [vmem:[#allocation2] ss:$0 sm:$0xff]  ;;  %v921_v44 = vld [vmem:[#allocation2 + $0x3] ss:$0 sm:$0xff] }
  0x4e   :  { %629 = vmatpush.msrb.mxu3 %v779_v42  ;;  %494 = vmatpush.msrb.mxu0 %v791_v49 }
  0x4f   :  { %555 = vmatpush.msrb.mxu1 %v760_v28  ;;  %613 = vmatpush.msrb.mxu2 %v791_v49  ;;  %v906_v28 = vld [vmem:[#allocation2 + $0x8] ss:$0 sm:$0xff] }
  0x50   :  { %630 = vmatpush.msrb.mxu3 %v786_v46  ;;  %498 = vmatpush.msrb.mxu0 %v799_v55 }
  0x51   :  { %557 = vmatpush.msrb.mxu1 %v762_v29  ;;  %614 = vmatpush.msrb.mxu2 %v799_v55  ;;  %v912_v29 = vld [vmem:[#allocation2 + $0x2] ss:$0 sm:$0xff] }
  0x52   :  { %631 = vmatpush.msrb.mxu3 %v794_v51  ;;  %502 = vmatpush.msrb.mxu0 %v807_v61 }
  0x53   :  { %559 = vmatpush.msrb.mxu1 %v776_v39  ;;  %615 = vmatpush.msrb.mxu2 %v807_v61 }
  0x54   :  { %632 = vmatpush.msrb.mxu3 %v803_v57  ;;  %506 = vmatpush.msrb.mxu0 %v818_v5 }
  0x55   :  { %561 = vmatpush.msrb.mxu1 %v779_v42  ;;  %616 = vmatpush.msrb.mxu2 %v818_v5 }
  0x56   :  { %633 = vmatpush.msrb.mxu3 %v809_v62  ;;  %510 = vmatpush.msrb.mxu0 %v821_v8 }
  0x57   :  { %563 = vmatpush.msrb.mxu1 %v786_v46  ;;  %617 = vmatpush.msrb.mxu2 %v821_v8 }
  0x58   :  { %634 = vmatpush.msrb.mxu3 %v816_v4  ;;  %514 = vmatpush.msrb.mxu0 %v830_v20 }
  0x59   :  { %565 = vmatpush.msrb.mxu1 %v794_v51  ;;  %618 = vmatpush.msrb.mxu2 %v830_v20 }
  0x5a   :  { %635 = vmatpush.msrb.mxu3 %v824_v13  ;;  %518 = vmatpush.msrb.mxu0 %v838_v27 }
  0x5b   :  { %567 = vmatpush.msrb.mxu1 %v803_v57  ;;  %619 = vmatpush.msrb.mxu2 %v838_v27 }
  0x5c   :  { %636 = vmatpush.msrb.mxu3 %v833_v22  ;;  %522 = vmatpush.msrb.mxu0 %v845_v37 }
  0x5d   :  { %569 = vmatpush.msrb.mxu1 %v809_v62  ;;  %620 = vmatpush.msrb.mxu2 %v845_v37 }
  0x5e   :  { %637 = vmatpush.msrb.mxu3 %v842_v31  ;;  %526 = vmatpush.msrb.mxu0 %v856_v47 }
  0x5f   :  { %571 = vmatpush.msrb.mxu1 %v816_v4  ;;  %621 = vmatpush.msrb.mxu2 %v856_v47 }
  0x60   :  { %638 = vmatpush.msrb.mxu3 %v847_v38  ;;  %530 = vmatpush.msrb.mxu0 %v858_v50 }
  0x61   :  { %573 = vmatpush.msrb.mxu1 %v824_v13  ;;  %622 = vmatpush.msrb.mxu2 %v858_v50 }
  0x62   :  { %v41_v16 = vpop.permute.xlu2 %40 }
  0x63   :  { %v55_v49 = vmul.f32 %v895_v12, %v41_v16  ;;  %575 = vmatpush.msrb.mxu1 %v833_v22 }
  0x65   :  { %v60_v60 = vadd.f32 %v906_v28, %v55_v49  ;;  %577 = vmatpush.msrb.mxu1 %v842_v31 }
  0x67   :  { %579 = vmatpush.msrb.mxu1 %v847_v38 }
  0x6c   :  { %v70_v18 = vpop.permute.xlu2 %69 }
  0x6d   :  { %v82_v61 = vmul.f32 %v915_v33, %v70_v18 }
  0x6f   :  { %v86_v1 = vadd.f32 %v82_v61, %v60_v60 }
  0x75   :  { %v122_v57 = vpop.permute.xlu2 %121 }
  0x76   :  { %v134_v3 = vmul.f32 %v921_v44, %v122_v57 }
  0x79   :  { %v92_v10 = vpop.permute.xlu1 %91 }
  0x7a   :  { %v36_v11 = vpop.permute.xlu0 %35  ;;  %v107_v51 = vmul.f32 %v912_v29, %v92_v10 }
  0x7b   :  { %v54_v17 = vmul.f32 %v895_v12, %v36_v11 }
  0x7d   :  { %v59_v32 = vadd.f32 %v906_v28, %v54_v17 }
  0x7e   :  { %v100_v9 = vpop.permute.xlu2 %99 }
  0x7f   :  { %v109_v30 = vmul.f32 %v912_v29, %v100_v9 }
  0x82   :  { %v118_v39 = vpop.permute.xlu1 %117 }
  0x83   :  { %v66_v42 = vpop.permute.xlu0 %65  ;;  %v133_v58 = vmul.f32 %v921_v44, %v118_v39 }
  0x84   :  { %v81_v46 = vmul.f32 %v915_v33, %v66_v42 }
  0x86   :  { %v85_v55 = vadd.f32 %v81_v46, %v59_v32 }
  0x87   :  { %v51_v31 = vpop.permute.xlu2 %50 }
  0x88   :  { %v111_v59 = vadd.f32 %v107_v51, %v85_v55  ;;  %v57_v40 = vmul.f32 %v895_v12, %v51_v31 }
  0x8a   :  { %v137_v62 = vadd.f32 %v133_v58, %v111_v59  ;;  %v62_v47 = vadd.f32 %v906_v28, %v57_v40 }
  0x8b   :  { %v96_v0 = vpop.permute.xlu1 %95 }
  0x8c   :  { %v141_v63 = vmax.f32 %v137_v62, 0.0  ;;  %v108_v2 = vmul.f32 %v912_v29, %v96_v0  ;;  %v46_v7 = vpop.permute.xlu0 %45  ;;  %v668_v62 = vld [vmem:[#allocation2 + $0x90] ss:$0 sm:$0xff] }
  0x8d   :  { %v56_v15 = vmul.f32 %v895_v12, %v46_v7 }
  0x8e   :  { %v947_v4 = vand.u32 4294901760, %v141_v63  ;;  %v112_v5 = vadd.f32 %v108_v2, %v86_v1 }
  0x8f   :  { %v61_v23 = vadd.f32 %v906_v28, %v56_v15 }
  0x90   :  { %325 = vmatmul.f32.vlgmr.msra.gmra.mxu1 %v947_v4  ;;  %v196_v6 = vsub.f32 %v141_v63, %v947_v4  ;;  %v138_v8 = vadd.f32 %v134_v3, %v112_v5  ;;  %v130_v52 = vpop.permute.xlu2 %129 }
  0x91   :  { %v136_v10 = vmul.f32 %v921_v44, %v130_v52 }
  0x92   :  { %391 = vmatmul.f32.vlgmr.msra.gmra.mxu2 %v196_v6  ;;  %v197_v13 = vand.u32 4294901760, %v196_v6  ;;  %v142_v14 = vmax.f32 %v138_v8, 0.0 }
  0x94   :  { %445 = vmatmul.f32.vlgmr.msra.gmra.mxu3 %v197_v13  ;;  %v198_v19 = vsub.f32 %v196_v6, %v197_v13  ;;  %v203_v20 = vand.u32 4294901760, %v142_v14  ;;  %v74_v21 = vpop.permute.xlu1 %73 }
  0x95   :  { %v83_v24 = vmul.f32 %v915_v33, %v74_v21  ;;  %v78_v43 = vpop.permute.xlu0 %77 }
  0x96   :  { %v199_v22 = vand.u32 4294901760, %v198_v19  ;;  %v204_v25 = vsub.f32 %v142_v14, %v203_v20  ;;  %v84_v48 = vmul.f32 %v915_v33, %v78_v43 }
  0x97   :  { %v87_v27 = vadd.f32 %v83_v24, %v61_v23 }
  0x98   :  { %200 = vmatmul.f32.vlgmr.msra.gmra.mxu0 %v199_v22  ;;  %329 = vmatmul.f32.gmra.mxu1 %v203_v20  ;;  %v205_v26 = vand.u32 4294901760, %v204_v25  ;;  %v88_v56 = vadd.f32 %v84_v48, %v62_v47 }
  0x99   :  { %v113_v37 = vadd.f32 %v109_v30, %v87_v27 }
  0x9a   :  { %396 = vmatmul.f32.gmra.mxu2 %v204_v25  ;;  %v206_v34 = vsub.f32 %v204_v25, %v205_v26 }
  0x9c   :  { %451 = vmatmul.f32.gmra.mxu3 %v205_v26  ;;  %v207_v35 = vand.u32 4294901760, %v206_v34 }
  0x9d   :  { %v126_v36 = vpop.permute.xlu1 %125 }
  0x9e   :  { %v135_v38 = vmul.f32 %v921_v44, %v126_v36 }
  0xa0   :  { %208 = vmatmul.f32.gmra.mxu0 %v207_v35  ;;  %v139_v41 = vadd.f32 %v135_v38, %v113_v37 }
  0xa2   :  { %v143_v45 = vmax.f32 %v139_v41, 0.0 }
  0xa4   :  { %v211_v50 = vand.u32 4294901760, %v143_v45 }
  0xa6   :  { %v104_v53 = vpop.permute.xlu1 %103  ;;  %333 = vmatmul.f32.gmra.mxu1 %v211_v50  ;;  %v212_v54 = vsub.f32 %v143_v45, %v211_v50 }
  0xa7   :  { %v110_v16 = vmul.f32 %v912_v29, %v104_v53 }
  0xa8   :  { %401 = vmatmul.f32.gmra.mxu2 %v212_v54  ;;  %v213_v11 = vand.u32 4294901760, %v212_v54 }
  0xa9   :  { %v114_v12 = vadd.f32 %v110_v16, %v88_v56 }
  0xaa   :  { %457 = vmatmul.f32.gmra.mxu3 %v213_v11  ;;  %v214_v17 = vsub.f32 %v212_v54, %v213_v11 }
  0xab   :  { %v140_v18 = vadd.f32 %v136_v10, %v114_v12 }
  0xac   :  { %v215_v32 = vand.u32 4294901760, %v214_v17 }
  0xad   :  { %v144_v28 = vmax.f32 %v140_v18, 0.0 }
  0xae   :  { %216 = vmatmul.f32.gmra.mxu0 %v215_v32 }
  0xaf   :  { %v219_v33 = vand.u32 4294901760, %v144_v28 }
  0xb1   :  { %337 = vmatmul.f32.gmra.mxu1 %v219_v33  ;;  %v220_v39 = vsub.f32 %v144_v28, %v219_v33 }
  0xb3   :  { %406 = vmatmul.f32.gmra.mxu2 %v220_v39  ;;  %v221_v42 = vand.u32 4294901760, %v220_v39 }
  0xb5   :  { %463 = vmatmul.f32.gmra.mxu3 %v221_v42  ;;  %v222_v46 = vsub.f32 %v220_v39, %v221_v42 }
  0xb7   :  { %v223_v49 = vand.u32 4294901760, %v222_v46 }
  0xb9   :  { %224 = vmatmul.f32.gmra.mxu0 %v223_v49  ;;  %581 = vmatmul.f32.vlgmr.msrb.gmra.mxu1 %v947_v4 }
  0xbb   :  { %540 = vmatmul.f32.vlgmr.msrb.gmra.mxu2 %v211_v50 }
  0xbd   :  { %589 = vmatmul.f32.vlgmr.msrb.gmra.mxu3 %v211_v50 }
  0xc1   :  { %532 = vmatmul.f32.vlgmr.msrb.gmra.mxu0 %v947_v4  ;;  %585 = vmatmul.f32.gmra.mxu1 %v203_v20 }
  0xc3   :  { %544 = vmatmul.f32.gmra.mxu2 %v219_v33 }
  0xc5   :  { %593 = vmatmul.f32.gmra.mxu3 %v219_v33 }
  0xc9   :  { %536 = vmatmul.f32.gmra.mxu0 %v203_v20 }
 0x10d   :  { %v326_v29 = vpop.f32.mrf.mxu1 }
 0x115   :  { %v201_v44 = vpop.f32.mrf.mxu0  ;;  %v392_v51 = vpop.f32.mrf.mxu2 }
 0x116   :  { %v330_v57 = vpop.f32.mrf.mxu1  ;;  %v202_v2 = vadd.f32 %v668_v62, %v201_v44 }
 0x117   :  { %v446_v55 = vpop.f32.mrf.mxu3 }
 0x118   :  { %v327_v5 = vadd.f32 %v326_v29, %v202_v2 }
 0x11a   :  { %v393_v13 = vadd.f32 %v392_v51, %v327_v5 }
 0x11c   :  { %v447_v20 = vadd.f32 %v446_v55, %v393_v13 }
 0x11d   :  { %v209_v58 = vpop.f32.mrf.mxu0  ;;  %v397_v59 = vpop.f32.mrf.mxu2 }
 0x11e   :  { %v210_v14 = vadd.f32 %v668_v62, %v209_v58 }
 0x11f   :  { %v452_v60 = vpop.f32.mrf.mxu3 }
 0x120   :  { %v331_v21 = vadd.f32 %v330_v57, %v210_v14 }
 0x122   :  { %v398_v34 = vadd.f32 %v397_v59, %v331_v21 }
 0x123   :  { %v334_v61 = vpop.f32.mrf.mxu1 }
 0x124   :  { %v453_v38 = vadd.f32 %v452_v60, %v398_v34 }
 0x12b   :  { %v217_v63 = vpop.f32.mrf.mxu0  ;;  %v402_v0 = vpop.f32.mrf.mxu2 }
 0x12c   :  { %v218_v3 = vadd.f32 %v668_v62, %v217_v63 }
 0x12d   :  { %v458_v1 = vpop.f32.mrf.mxu3 }
 0x12e   :  { %v338_v4 = vpop.f32.mrf.mxu1  ;;  %v335_v6 = vadd.f32 %v334_v61, %v218_v3 }
 0x130   :  { %v403_v15 = vadd.f32 %v402_v0, %v335_v6 }
 0x132   :  { %v459_v22 = vadd.f32 %v458_v1, %v403_v15 }
 0x136   :  { %v225_v7 = vpop.f32.mrf.mxu0  ;;  %v407_v8 = vpop.f32.mrf.mxu2 }
 0x137   :  { %v226_v19 = vadd.f32 %v668_v62, %v225_v7  ;;  %v582_v24 = vpop.f32.mrf.mxu1 }
 0x138   :  { %v464_v9 = vpop.f32.mrf.mxu3 }
 0x139   :  { %v339_v23 = vadd.f32 %v338_v4, %v226_v19 }
 0x13b   :  { %v408_v35 = vadd.f32 %v407_v8, %v339_v23 }
 0x13d   :  { %v465_v40 = vadd.f32 %v464_v9, %v408_v35 }
 0x13e   :  { %v533_v25 = vpop.f32.mrf.mxu0  ;;  %v541_v26 = vpop.f32.mrf.mxu2 }
 0x13f   :  { %v534_v27 = vadd.f32 %v533_v25, %v447_v20  ;;  %v542_v30 = vadd.f32 %v541_v26, %v459_v22  ;;  %v586_v48 = vpop.f32.mrf.mxu1 }
 0x140   :  { %v590_v31 = vpop.f32.mrf.mxu3 }
 0x141   :  { %v583_v36 = vadd.f32 %v582_v24, %v534_v27  ;;  %v591_v37 = vadd.f32 %v590_v31, %v542_v30 }
 0x143   :  { %598 = vst.msk [vmem:[%s982_s2] sm:$0xff] %vm597_vm0, %v583_v36 }
 0x144   :  { %600 = vst.msk [vmem:[%s982_s2 + $0x10] sm:$0xff] %vm597_vm0, %v591_v37 }
 0x146   :  { %v537_v41 = vpop.f32.mrf.mxu0  ;;  %v545_v43 = vpop.f32.mrf.mxu2 }
 0x147   :  { %v538_v45 = vadd.f32 %v537_v41, %v453_v38  ;;  %v546_v47 = vadd.f32 %v545_v43, %v465_v40 }
 0x148   :  { %v594_v50 = vpop.f32.mrf.mxu3 }
 0x149   :  { %v587_v52 = vadd.f32 %v586_v48, %v538_v45  ;;  %v595_v53 = vadd.f32 %v594_v50, %v546_v47 }
 0x14b   :  { %599 = vst.msk [vmem:[%s982_s2 + $0x8] sm:$0xff] %vm597_vm0, %v587_v52 }
 0x14c   :  { %601 = vst.msk [vmem:[%s982_s2 + $0x18] sm:$0xff] %vm597_vm0, %v595_v53 }
 0x14d   :  { %606 = vsyncpa [#allocation3], 1 }

</bundles_post_ra>
